<compile_context>
chip_gen: v5e
topology: v5e:2x2
jax: 0.10.0
libtpu: 0.0.40
codegen_flags: <defaults>
</compile_context>

<pallas_src>
import functools

import jax
import jax.numpy as jnp
from jax.experimental import pallas as pl
from jax.experimental.pallas import tpu as pltpu


def _round_up(x, m):
    return ((x + m - 1) // m) * m


def _vmem_capacity_bytes():
    """Per-TensorCore VMEM capacity; conservative v7x default if query fails."""
    try:
        v = int(pltpu.get_tpu_info().vmem_capacity_bytes)
        if v > 0:
            return v
    except Exception:
        pass
    return 64 * 1024 * 1024


def _num_tensorcores():
    """2 only on dual-TensorCore parts (v7x); default 1 when unknown (v5e/v6e)."""
    try:
        info = pltpu.get_tpu_info()
        for attr in ("num_cores", "core_count", "tensorcores_per_chip"):
            v = getattr(info, attr, None)
            if v:
                return max(1, min(2, int(v)))
    except Exception:
        pass
    try:
        v = getattr(jax.devices()[0], "num_cores", None)
        if v:
            return max(1, min(2, int(v)))
    except Exception:
        pass
    return 1


def _bce_partial_kernel(p_ref, y_ref, out_ref, *, tile_rows, total_rows,
                        steps_per_part, binary_targets):
    """Accumulate (8, D) partial BCE sums into the resident output block."""
    part = pl.program_id(0)
    t = pl.program_id(1)

    @pl.when(t == 0)
    def _():
        out_ref[...] = jnp.zeros(out_ref.shape, out_ref.dtype)

    # Cast on the VPU; inputs may arrive as bf16 / int8 straight from HBM (fewer bytes).
    p = p_ref[...].astype(jnp.float32)
    y = y_ref[...].astype(jnp.float32)
    tr, d = p.shape

    if binary_targets:
        # Strictly-binary targets: one EUP log per element instead of two.
        p_sel = jnp.where(y > 0.5, p, 1.0 - p)
        bce = -jnp.maximum(jnp.log(p_sel), -100.0)
    else:
        # PyTorch BCELoss clamps each log term at -100 (soft targets supported).
        log_p = jnp.maximum(jnp.log(p), -100.0)
        log_1mp = jnp.maximum(jnp.log(1.0 - p), -100.0)
        bce = -(y * log_p + (1.0 - y) * log_1mp)

    # Mask rows outside the real array (cdiv tail + clamped duplicate blocks).
    logical_start = (part * steps_per_part + t) * tile_rows
    row_ids = logical_start + jax.lax.broadcasted_iota(jnp.int32, (tr, 1), 0)
    bce = jnp.where(row_ids < total_rows, bce, 0.0)

    # Fold row-groups of 8 with VPU-only adds; no cross-lane reduce, no scalar scratch.
    partial = bce.reshape(tr // 8, 8, d).sum(axis=0)
    out_ref[...] += partial.reshape(out_ref.shape)


def bce_mean_pallas(output1, output2, *, binary_targets=False,
                    bytes_target=8 * 1024 * 1024, num_parallel=None):
    """Mean binary cross-entropy (PyTorch BCELoss 'mean') via a tiled Pallas kernel."""
    assert output1.shape == output2.shape and output1.ndim == 2
    B, D = output1.shape
    row_bytes = D * (jnp.dtype(output1.dtype).itemsize
                     + jnp.dtype(output2.dtype).itemsize)

    # Generation-aware VMEM budgets (128 MiB on v5e/v6e, 64 MiB per TC on v7x).
    vmem_cap = _vmem_capacity_bytes()
    tile_budget = min(48 * 1024 * 1024, int(vmem_cap * 0.4))

    # Byte-based tile sizing: ~bytes_target of streamed input per grid step, clamped so
    # the double-buffered inputs fit the VMEM budget, rounded to f32 sublane multiples.
    tr = max(8, int(bytes_target) // row_bytes)
    tr = min(tr, max(8, tile_budget // (2 * row_bytes)))   # 2 pipeline buffers
    tr = min(tr, _round_up(B, 8))
    tr = max(8, (tr // 8) * 8)

    n_blocks = pl.cdiv(B, tr)
    cores = int(num_parallel) if num_parallel is not None else _num_tensorcores()
    P = 2 if (cores >= 2 and n_blocks >= 2) else 1
    T = pl.cdiv(n_blocks, P)
    last_block = n_blocks - 1

    def in_map(p, t):
        # Clamp so the tail part never indexes a fully out-of-range block; the kernel's
        # logical-row mask zeroes any duplicated / out-of-bounds rows.
        return (jnp.minimum(p * T + t, last_block), 0)

    kernel = functools.partial(
        _bce_partial_kernel, tile_rows=tr, total_rows=B,
        steps_per_part=T, binary_targets=binary_targets)

    # Scoped VMEM sized from the actual footprint (+ headroom), capped per generation.
    in_vmem = 2 * tr * row_bytes
    out_vmem = 2 * 8 * D * 4
    vmem_limit = min(int(vmem_cap * 0.8),
                     max(32 * 1024 * 1024, in_vmem + out_vmem + (8 << 20)))

    partials = pl.pallas_call(
        kernel,
        out_shape=jax.ShapeDtypeStruct((P, 8, D), jnp.float32),
        grid_spec=pltpu.PrefetchScalarGridSpec(
            num_scalar_prefetch=0,
            grid=(P, T),
            in_specs=[
                pl.BlockSpec((tr, D), in_map),
                pl.BlockSpec((tr, D), in_map),
            ],
            out_specs=pl.BlockSpec((1, 8, D), lambda p, t: (p, 0, 0)),
        ),
        compiler_params=pltpu.CompilerParams(
            dimension_semantics=("parallel", "arbitrary"),
            vmem_limit_bytes=int(vmem_limit),
        ),
    )(output1, output2)

    total = jnp.sum(partials)
    # Divide by the TOTAL element count, as a precomputed reciprocal.
    return total * (1.0 / (B * D))


def weighted_loss(output1, output2, move_ids, weight_table, **kw):
    """Forward pass of WeightedLoss: BCELoss(output1, output2) * weight_table[move_ids]."""
    mean_bce = bce_mean_pallas(output1, output2, **kw)
    # Dict-lookup equivalent (tiny gather) and per-sample scaling stay in the wrapper;
    # note jnp.take clamps out-of-range ids (the PyTorch dict lookup would raise).
    weights = jnp.take(weight_table, move_ids)
    return mean_bce * weights          # shape [batch], same as the PyTorch module


if __name__ == "__main__":
    key = jax.random.PRNGKey(0)
    k_p, k_y, k_w, k_ids = jax.random.split(key, 4)

    # Small demo: B not a multiple of the tile -> exercises the cdiv tail mask (and the
    # clamped duplicate block when P=2 on a dual-core chip).
    B, D = 130, 128
    NUM_MOVES = 256

    # Predictions in (0, 1) (as if post-sigmoid), binary targets.
    output1 = jax.random.uniform(k_p, (B, D), minval=1e-4, maxval=1.0 - 1e-4)
    output2 = (jax.random.uniform(k_y, (B, D)) > 0.5).astype(jnp.float32)
    move_ids = jax.random.randint(k_ids, (B,), 0, NUM_MOVES)

    # TODO(synk): production weight table comes from move_loss_weight.csv; synthetic
    # deterministic stand-in here (raw "counts" in [1, 1225] normalized by 1225).
    raw = jax.random.uniform(k_w, (NUM_MOVES,), minval=1.0, maxval=1225.0)
    weight_table = raw / 1225.0

    # Small bytes_target just to force several reduction steps at this demo size.
    loss = weighted_loss(output1, output2, move_ids, weight_table,
                         bytes_target=32 * 1024)
    jax.block_until_ready(loss)

    # Binary-target fast path (targets here are exactly {0, 1}).
    loss_fast = weighted_loss(output1, output2, move_ids, weight_table,
                              bytes_target=32 * 1024, binary_targets=True)
    jax.block_until_ready(loss_fast)

    # Pure-JAX reference: BCE mean with -100 log clamp, then per-sample weight scaling.
    log_p = jnp.maximum(jnp.log(output1), -100.0)
    log_1mp = jnp.maximum(jnp.log(1.0 - output1), -100.0)
    ref_mean = (-(output2 * log_p + (1.0 - output2) * log_1mp)).mean()
    ref = ref_mean * jnp.take(weight_table, move_ids)

    assert loss.shape == (B,)
    assert jnp.allclose(loss, ref, rtol=1e-5, atol=1e-6), (loss[:4], ref[:4])
    assert jnp.allclose(loss_fast, ref, rtol=1e-5, atol=1e-6), (loss_fast[:4], ref[:4])
    print("KERNEL_OK")
</pallas_src>

<mosaic_0001>
module attributes {stable_mosaic.version = 11 : i64} {
  func.func @_bce_partial_kernel(%arg0: i32, %arg1: i32, %arg2: memref<32x128xf32, #tpu.memory_space<vmem>>, %arg3: memref<32x128xf32, #tpu.memory_space<vmem>>, %arg4: memref<1x8x128xf32, #tpu.memory_space<vmem>>) attributes {dimension_semantics = [#tpu.dimension_semantics<parallel>, #tpu.dimension_semantics<arbitrary>], iteration_bounds = array<i64: 1, 5>, scalar_prefetch = 0 : i64, scratch_operands = 0 : i64, tpu.core_type = #tpu.core_type<tc>, window_params = [{transform_indices = @transform_0, window_bounds = array<i64: 32, 128>}, {transform_indices = @transform_1, window_bounds = array<i64: 32, 128>}, {transform_indices = @transform_2, window_bounds = array<i64: 1, 8, 128>}]} {
    %c0_i32 = arith.constant 0 : i32
    %0 = arith.cmpi eq, %arg1, %c0_i32 : i32
    %1 = arith.extui %0 : i1 to i32
    %c0_i32_0 = arith.constant 0 : i32
    %2 = arith.cmpi ne, %1, %c0_i32_0 : i32
    scf.if %2 {
      %cst_16 = arith.constant 0.000000e+00 : f32
      %38 = vector.broadcast %cst_16 : f32 to vector<1x8x128xf32>
      %c0_17 = arith.constant 0 : index
      %c0_18 = arith.constant 0 : index
      %c0_19 = arith.constant 0 : index
      %39 = vector.load %arg4[%c0_17, %c0_18, %c0_19] : memref<1x8x128xf32, #tpu.memory_space<vmem>>, vector<1x8x128xf32>
      tpu.vector_store %arg4[%c0_17, %c0_18, %c0_19], %38 {strides = array<i32>} : memref<1x8x128xf32, #tpu.memory_space<vmem>>, vector<1x8x128xf32>,
    } else {
    }
    %c0 = arith.constant 0 : index
    %c0_1 = arith.constant 0 : index
    %3 = vector.load %arg2[%c0, %c0_1] : memref<32x128xf32, #tpu.memory_space<vmem>>, vector<32x128xf32>
    %c0_2 = arith.constant 0 : index
    %c0_3 = arith.constant 0 : index
    %4 = vector.load %arg3[%c0_2, %c0_3] : memref<32x128xf32, #tpu.memory_space<vmem>>, vector<32x128xf32>
    %5 = math.log %3 : vector<32x128xf32>
    %cst = arith.constant -1.000000e+02 : f32
    %6 = vector.broadcast %cst : f32 to vector<32x128xf32>
    %7 = arith.maximumf %5, %6 : vector<32x128xf32>
    %cst_4 = arith.constant 1.000000e+00 : f32
    %8 = vector.broadcast %cst_4 : f32 to vector<32x128xf32>
    %9 = arith.subf %8, %3 : vector<32x128xf32>
    %10 = math.log %9 : vector<32x128xf32>
    %cst_5 = arith.constant -1.000000e+02 : f32
    %11 = vector.broadcast %cst_5 : f32 to vector<32x128xf32>
    %12 = arith.maximumf %10, %11 : vector<32x128xf32>
    %13 = arith.mulf %4, %7 : vector<32x128xf32>
    %cst_6 = arith.constant 1.000000e+00 : f32
    %14 = vector.broadcast %cst_6 : f32 to vector<32x128xf32>
    %15 = arith.subf %14, %4 : vector<32x128xf32>
    %16 = arith.mulf %15, %12 : vector<32x128xf32>
    %17 = arith.addf %13, %16 : vector<32x128xf32>
    %cst_7 = arith.constant 0.000000e+00 : f32
    %18 = vector.broadcast %cst_7 : f32 to vector<32x128xf32>
    %19 = arith.subf %18, %17 : vector<32x128xf32>
    %c5_i32 = arith.constant 5 : i32
    %20 = arith.muli %arg0, %c5_i32 : i32
    %21 = arith.addi %20, %arg1 : i32
    %c32_i32 = arith.constant 32 : i32
    %22 = arith.muli %21, %c32_i32 : i32
    %23 = tpu.iota {dimensions = array<i32: 0>} : vector<32x1xi32>
    %24 = vector.broadcast %22 : i32 to vector<32x1xi32>
    %25 = arith.addi %24, %23 : vector<32x1xi32>
    %c130_i32 = arith.constant 130 : i32
    %26 = vector.broadcast %c130_i32 : i32 to vector<32x1xi32>
    %27 = arith.cmpi slt, %25, %26 : vector<32x1xi32>
    %cst_8 = arith.constant 0.000000e+00 : f32
    %28 = vector.shape_cast %27 : vector<32x1xi1> to vector<32x1xi1>
    %29 = vector.broadcast %28 : vector<32x1xi1> to vector<32x128xi1>
    %30 = vector.broadcast %cst_8 : f32 to vector<32x128xf32>
    %31 = arith.select %29, %19, %30 : vector<32x128xi1>, vector<32x128xf32>
    %32 = vector.shape_cast %31 : vector<32x128xf32> to vector<4x8x128xf32>
    %cst_9 = arith.constant dense<0.000000e+00> : vector<8x128xf32>
    %33 = vector.multi_reduction <add>, %32, %cst_9 [0] : vector<4x8x128xf32> to vector<8x128xf32>
    %c0_10 = arith.constant 0 : index
    %c0_11 = arith.constant 0 : index
    %c0_12 = arith.constant 0 : index
    %34 = vector.load %arg4[%c0_10, %c0_11, %c0_12] : memref<1x8x128xf32, #tpu.memory_space<vmem>>, vector<1x8x128xf32>
    %35 = vector.shape_cast %33 : vector<8x128xf32> to vector<1x8x128xf32>
    %36 = arith.addf %34, %35 : vector<1x8x128xf32>
    %c0_13 = arith.constant 0 : index
    %c0_14 = arith.constant 0 : index
    %c0_15 = arith.constant 0 : index
    %37 = vector.load %arg4[%c0_13, %c0_14, %c0_15] : memref<1x8x128xf32, #tpu.memory_space<vmem>>, vector<1x8x128xf32>
    tpu.vector_store %arg4[%c0_13, %c0_14, %c0_15], %36 {strides = array<i32>} : memref<1x8x128xf32, #tpu.memory_space<vmem>>, vector<1x8x128xf32>,
    return
  }
  func.func @transform_0(%arg0: i32, %arg1: i32) -> (i32, i32) {
    %c5_i32 = arith.constant 5 : i32
    %0 = arith.muli %arg0, %c5_i32 : i32
    %1 = arith.addi %0, %arg1 : i32
    %c4_i32 = arith.constant 4 : i32
    %2 = arith.minsi %1, %c4_i32 : i32
    %c0_i32 = arith.constant 0 : i32
    %c0_i32_0 = arith.constant 0 : i32
    return %2, %c0_i32 : i32, i32
  }
  func.func @transform_1(%arg0: i32, %arg1: i32) -> (i32, i32) {
    %c5_i32 = arith.constant 5 : i32
    %0 = arith.muli %arg0, %c5_i32 : i32
    %1 = arith.addi %0, %arg1 : i32
    %c4_i32 = arith.constant 4 : i32
    %2 = arith.minsi %1, %c4_i32 : i32
    %c0_i32 = arith.constant 0 : i32
    %c0_i32_0 = arith.constant 0 : i32
    return %2, %c0_i32 : i32, i32
  }
  func.func @transform_2(%arg0: i32, %arg1: i32) -> (i32, i32, i32) {
    %c0_i32 = arith.constant 0 : i32
    %c0_i32_0 = arith.constant 0 : i32
    %c0_i32_1 = arith.constant 0 : i32
    return %arg0, %c0_i32, %c0_i32_0 : i32, i32, i32
  }
}

</mosaic_0001>

<bundles_post_ra>
// kernel: tpu_custom_call.1
= control target key start
LH: loop header
LB: loop body
LE: loop exit
PB: predicated region body
PF: predicated region fallthrough
CT: control target
= control target key end

     0   :  { %7 = vsyncpa [#allocation3], 0  ;;  %s941_s0 = inlined_call_operand.hbm [shape: f32[130,128], index: 0, kind: input, shape index: {}]   ;;  %s942_s1 = inlined_call_operand.hbm [shape: f32[130,128], index: 1, kind: input, shape index: {}]   ;;  %s943_s2 = inlined_call_operand.hbm [shape: f32[1,8,128], index: 2, kind: output, shape index: {}]  }
   0x1   :  { %9 = vsyncpa [#allocation3 + $0x1], 0 }
   0x2   :  { %10 = vsyncpa [#allocation6], 0 }
   0x3   :  { %12 = vsyncpa [#allocation6 + $0x1], 0 }
   0x4   :  { %13 = vsyncpa [#allocation4], 0  ;;  %s753_s9 = smov 0   ;;  %s755_s10 = smov 0  }
   0x5   :  { %s757_s11 = smov 0   ;;  %s759_s12 = smov 0  }
   0x6   :  { %s761_s13 = smov 0   ;;  %s763_s14 = smov 0  }
   0x7 LB: > { %s28_s15 = sadd.s32 1, %s724_s13  ;;  %p37_p1 = scmp.lt.s32.totalorder %s724_s13, 4  ;;  %s728_s14 = sphi %s763_s14, %s19_s14   ;;  %s724_s13 = sphi %s761_s13, %s952_s13   ;;  %s720_s12 = sphi %s759_s12, %s951_s12   ;;  %s716_s11 = sphi %s757_s11, %s950_s11   ;;  %s712_s10 = sphi %s755_s10, %s949_s10   ;;  %s708_s9 = sphi %s753_s9, %s948_s9  }
   0x8   : > { %p29_p0 = scmp.ge.s32.totalorder %s28_s15, 5  ;;  %s458_s16 = sadd.s32 4294967295, %s728_s14  }
   0x9   : > { %p53_p2 = scmp.ne.s32.totalorder %s716_s11, %s712_s10  ;;  %p54_p4 = scmp.eq.s32.totalorder %s728_s14, 0 }
   0xa   : > { %s954_s15 = smov (%p29_p0, %s28_s15), 0  ;;  %p59_p5 = scmp.ne.s32.totalorder %s712_s10, %s708_s9 }
   0xb   : > { %s789_s17 = scalar_select %p37_p1, %s724_s13, 4 }
   0xc   : > { %p41_p3 = scmp.lt.s32.totalorder %s954_s15, 4  ;;  %p60_p6 = scmp.eq.s32.totalorder %s458_s16, 0 }
   0xd   : > { %p797_p7 = por %p54_p4, %p53_p2  ;;  %s46_s22 = sadd.s32 1, %s716_s11 }
   0xe   : > { %s42_s18 = scalar_select %p41_p3, %s954_s15, 4 }
   0xf   : > { %p801_p8 = por %p60_p6, %p59_p5  ;;  %p460_p10 = scmp.ge.s32.totalorder %s728_s14, 5 }
  0x10   : > { %s43_s21 = ssub.s32 %s789_s17, %s42_s18 }
  0x11   : > { %p44_p9 = scmp.eq.s32.totalorder %s43_s21, 0  ;;  %139 = sbr.rel (%p460_p10) target bundleno = 94 (0x5e), region = 16 }
  0x13   : > { %s808_s23 = scalar_select %p44_p9, %s716_s11, %s46_s22  }
  0x16   : > { %142 = sbr.rel (!%p797_p7) target bundleno = 58 (0x3a), region = 20  ;;  %s143_s24 = sand.u32 (%p797_p7), 1, %s716_s11  }
  0x17   : > { %s462_s25 = sshll.u32 (%p797_p7), %s789_s17, 2  ;;  %s461_s26 = sshll.u32 (%p797_p7), %s143_s24, 5 }
  0x18   : > { %s153_s27 = ssub.s32 (%p797_p7), 17, %s462_s25  ;;  %s818_s3 = scalar_lea.sflag (%p797_p7), [#allocation3], %s143_s24 }
  0x19   : > { %p154_p11 = scmp.lt.s32.totalorder (%p797_p7), %s153_s27, 4  ;;  %s147_s4 = scalar_lea.vmem (%p797_p7), [#allocation2], %s461_s26 }
  0x1b   : > { %s956_s27 = smov (!%p154_p11, %s153_s27), 4 }
  0x1c   : > { %s463_s28 = sshll.u32 %s956_s27, 3 }
  0x1d   : > { %s157_s29 = ssub.s32 32, %s463_s28 }
  0x1e   : > { %s158_s30 = sshll.u32 %s157_s29, 4 }
  0x1f   : > { %159 = vsyncadd %s818_s3, %s158_s30  ;;  %p821_p12 = scmp.ne.s32.totalorder %s463_s28, 0  ;;  %s484_s6 = sshll.u32 %s789_s17, 5 }
  0x20   : > { %s162_s9 = scalar_lea.hbm %s941_s0, %s484_s6  ;;  %s829_s18 = sshll.u32 %s147_s4, 4  ;;  %s167_s18 = int_to_ptr.vmem [resolvable:$true] %s829_s18 }
  0x21   : > { %s164_s21 = sshll.u32 %s162_s9, 4  ;;  %s467_s22 = sshll.u32 %s956_s27, 7  ;;  %s832_s21 = int_to_ptr.hbm [resolvable:$true] %s164_s21 }
  0x22   : > { %s564_s24 = sshra.s32 %s832_s21, 4  ;;  %s566_s25 = sshrl.u32 %s467_s22, 4  ;;  %s565_s24 = int_to_ptr.hbm [resolvable:$true] %s564_s24 }
  0x23   : > { %s571_s26 = scalar_lea.hbm %s565_s24, %s566_s25  ;;  %s575_s30 = scalar_lea.hbm %s941_s0, 136 }
  0x24   : > { %p572_p13 = scmp.ne.s32.totalorder %s565_s24, %s571_s26  ;;  %p577_p2 = scmp.lt.s32.totalorder %s575_s30, %s571_s26 }
  0x26   : > { %p573_p0 = pnand %p572_p13, %p821_p12 }
  0x28   : > { %p574_p1 = pneg %p573_p0 }
  0x2a   : > { %p579_p3 = pnand %p577_p2, %p574_p1 }
  0x2c   : > { %582 = shalt.err (!%p579_p3)
}
  0x2d   : > { %s583_s4 = sshra.s32 %s167_s18, 4  ;;  %s730_s7 = smov [#allocation2]   ;;  %s584_s4 = int_to_ptr.vmem [resolvable:$true] %s583_s4 }
  0x2e   : > { %s590_s6 = scalar_lea.vmem %s584_s4, %s566_s25  ;;  %s594_s8 = scalar_lea.vmem %s730_s7, 64 }
  0x2f   : > { %p591_p4 = scmp.ne.s32.totalorder %s584_s4, %s590_s6  ;;  %p596_p9 = scmp.lt.s32.totalorder %s594_s8, %s590_s6 }
  0x31   : > { %p592_p5 = pnand %p591_p4, %p821_p12 }
  0x33   : > { %p593_p6 = pneg %p592_p5 }
  0x35   : > { %p598_p10 = pnand %p596_p9, %p593_p6 }
  0x37   : > { %601 = shalt.err (!%p598_p10)
}
  0x38   : > { %s731_s9 = smov 128   ;;  %s732_s24 = smov 8  }
  0x39   : > { %172 = dma.hbm_to_vmem [thread:$0]  (%p821_p12), %s832_s21, %s467_s22, %s167_s18, %s818_s3, %s731_s9, %s731_s9, %s732_s24  }
  0x3a PF: > { %175 = sbr.rel (!%p797_p7) target bundleno = 94 (0x5e), region = 24  ;;  %s176_s25 = sand.u32 (%p797_p7), 1, %s716_s11  }
  0x3b   : > { %s469_s26 = sshll.u32 (%p797_p7), %s789_s17, 2  ;;  %s468_s28 = sshll.u32 (%p797_p7), %s176_s25, 5 }
  0x3c   : > { %s186_s29 = ssub.s32 (%p797_p7), 17, %s469_s26  ;;  %s862_s6 = scalar_lea.sflag (%p797_p7), [#allocation6], %s176_s25 }
  0x3d   : > { %p187_p11 = scmp.lt.s32.totalorder (%p797_p7), %s186_s29, 4  ;;  %s180_s27 = scalar_lea.vmem (%p797_p7), [#allocation5], %s468_s28 }
  0x3f   : > { %s958_s29 = smov (!%p187_p11, %s186_s29), 4 }
  0x40   : > { %s470_s30 = sshll.u32 %s958_s29, 3 }
  0x41   : > { %s190_s4 = ssub.s32 32, %s470_s30 }
  0x42   : > { %s191_s5 = sshll.u32 %s190_s4, 4 }
  0x43   : > { %192 = vsyncadd %s862_s6, %s191_s5  ;;  %p865_p7 = scmp.ne.s32.totalorder %s470_s30, 0  ;;  %s485_s3 = sshll.u32 %s789_s17, 5 }
  0x44   : > { %s195_s22 = scalar_lea.hbm %s942_s1, %s485_s3  ;;  %s873_s7 = sshll.u32 %s180_s27, 4  ;;  %s200_s7 = int_to_ptr.vmem [resolvable:$true] %s873_s7 }
  0x45   : > { %s197_s8 = sshll.u32 %s195_s22, 4  ;;  %s474_s9 = sshll.u32 %s958_s29, 7  ;;  %s876_s8 = int_to_ptr.hbm [resolvable:$true] %s197_s8 }
  0x46   : > { %s603_s24 = sshra.s32 %s876_s8, 4  ;;  %s605_s25 = sshrl.u32 %s474_s9, 4  ;;  %s604_s24 = int_to_ptr.hbm [resolvable:$true] %s603_s24 }
  0x47   : > { %s610_s26 = scalar_lea.hbm %s604_s24, %s605_s25  ;;  %s614_s30 = scalar_lea.hbm %s942_s1, 136 }
  0x48   : > { %p611_p12 = scmp.ne.s32.totalorder %s604_s24, %s610_s26  ;;  %p616_p1 = scmp.lt.s32.totalorder %s614_s30, %s610_s26 }
  0x4a   : > { %p612_p13 = pnand %p611_p12, %p865_p7 }
  0x4c   : > { %p613_p0 = pneg %p612_p13 }
  0x4e   : > { %p618_p2 = pnand %p616_p1, %p613_p0 }
  0x50   : > { %621 = shalt.err (!%p618_p2)
}
  0x51   : > { %s622_s4 = sshra.s32 %s200_s7, 4  ;;  %s733_s27 = smov [#allocation5]   ;;  %s623_s4 = int_to_ptr.vmem [resolvable:$true] %s622_s4 }
  0x52   : > { %s629_s5 = scalar_lea.vmem %s623_s4, %s605_s25  ;;  %s633_s3 = scalar_lea.vmem %s733_s27, 64 }
  0x53   : > { %p630_p3 = scmp.ne.s32.totalorder %s623_s4, %s629_s5  ;;  %p635_p6 = scmp.lt.s32.totalorder %s633_s3, %s629_s5 }
  0x55   : > { %p631_p4 = pnand %p630_p3, %p865_p7 }
  0x57   : > { %p632_p5 = pneg %p631_p4 }
  0x59   : > { %p637_p9 = pnand %p635_p6, %p632_p5 }
  0x5b   : > { %640 = shalt.err (!%p637_p9)
}
  0x5c   : > { %s734_s18 = smov 128   ;;  %s735_s21 = smov 8  }
  0x5d   : > { %205 = dma.hbm_to_vmem [thread:$0]  (%p865_p7), %s876_s8, %s474_s9, %s200_s7, %s862_s6, %s734_s18, %s734_s18, %s735_s21  }
  0x5e PF: > { %p475_p10 = scmp.ge.s32.totalorder %s728_s14, 1  ;;  %p207_p11 = scmp.lt.s32.totalorder %s728_s14, 6 }
  0x60   : > { %p208_p12 = pnand %p475_p10, %p207_p11 }
  0x61   : > { %s213_s22 = sand.u32 (!%p208_p12), 1, %s712_s10  }
  0x62   : > { %211 = sbr.rel (%p208_p12) target bundleno = 151 (0x97), region = 28  ;;  %s476_s24 = sshll.u32 (!%p208_p12), %s213_s22, 5 }
  0x63   : > { %s214_s25 = scalar_lea.sflag (!%p208_p12), [#allocation3], %s213_s22  ;;  %s217_s26 = scalar_lea.vmem (!%p208_p12), [#allocation2], %s476_s24 }
  0x67   : > { %695 = dma.done.wait (%p801_p8), %s214_s25, 512  }
  0x68   : > { %697 = vsyncadd (%p801_p8), %s214_s25, 4294966784  ;;  %s224_s29 = scalar_lea.sflag [#allocation6], %s213_s22  ;;  %s906_s6 = scalar_lea.vmem [#allocation5], %s476_s24 }
  0x69   : > { %699 = dma.done.wait (%p801_p8), %s224_s29, 512  }
  0x6a   : > { %701 = vsyncadd (%p801_p8), %s224_s29, 4294966784  ;;  %p478_p7 = scmp.ne.s32.totalorder %s720_s12, 0 }
  0x6c   : > { %270 = sbr.rel (%p478_p7) target bundleno = 115 (0x73), region = 40 }
  0x71   : > { %v736_v0 = vmov 0.0  }
  0x72   : > { %271 = vst [vmem:[#allocation7] sm:$0xff] %v736_v0 }
  0x73 PF: > { %v272_v1 = vld [vmem:[%s217_s26] sm:$0xff]  ;;  %v273_v2 = vld [vmem:[%s217_s26 + $0x8] sm:$0xff]  ;;  %v274_v3 = vld [vmem:[%s217_s26 + $0x10] sm:$0xff]  ;;  %v331_v9 = vlaneseq  ;;  %s479_s20 = sshll.u32 %s720_s12, 5  ;;  %s737_s12 = smov [#allocation7]  }
  0x74   : > { %v275_v4 = vld [vmem:[%s217_s26 + $0x18] sm:$0xff]  ;;  %548 = vlog2.f32 %v272_v1  ;;  %v292_v5 = vsub.f32 1.0, %v272_v1  ;;  %v293_v6 = vsub.f32 1.0, %v273_v2  ;;  %v294_v7 = vsub.f32 1.0, %v274_v3  ;;  %v276_v11 = vld [vmem:[%s906_s6] sm:$0xff]  ;;  %v277_v13 = vld [vmem:[%s906_s6 + $0x8] sm:$0xff] }
  0x75   : > { %550 = vlog2.f32 %v273_v2  ;;  %v295_v8 = vsub.f32 1.0, %v275_v4  ;;  %v278_v14 = vld [vmem:[%s906_s6 + $0x10] sm:$0xff]  ;;  %v332_v16 = vshrl.u32 %v331_v9, 7  ;;  %v279_v20 = vld [vmem:[%s906_s6 + $0x18] sm:$0xff]  ;;  %v312_v23 = vsub.f32 1.0, %v276_v11  ;;  %s371_s19 = sshll.u32 %s737_s12, 4  ;;  %s372_s19 = int_to_ptr.vmem [resolvable:$true] %s371_s19 }
  0x76   : > { %552 = vlog2.f32 %v274_v3  ;;  %v313_v27 = vsub.f32 1.0, %v277_v13  ;;  %v314_v28 = vsub.f32 1.0, %v278_v14  ;;  %v336_v33 = vstv %s479_s20  ;;  %s373_s9 = sshll.u32 %s943_s2, 4  ;;  %p492_p8 = scmp.eq.s32.totalorder %s458_s16, 4  ;;  %s374_s9 = int_to_ptr.hbm [resolvable:$true] %s373_s9 }
  0x77   : > { %554 = vlog2.f32 %v275_v4  ;;  %v333_v32 = vadd.s32 8, %v332_v16  ;;  %v315_v37 = vsub.f32 1.0, %v279_v20  ;;  %v334_v38 = vadd.s32 16, %v332_v16 }
  0x78   : > { %556 = vlog2.f32 %v292_v5  ;;  %v335_v43 = vadd.s32 24, %v332_v16  ;;  %v337_v47 = vadd.s32 %v336_v33, %v332_v16 }
  0x79   : > { %558 = vlog2.f32 %v293_v6  ;;  %v338_v51 = vadd.s32 %v336_v33, %v333_v32  ;;  %v339_v55 = vadd.s32 %v336_v33, %v334_v38  ;;  %v360_v9 = vld [vmem:[#allocation7] sm:$0xff] }
  0x7a   : > { %v549_v10 = vpop.eup %548  ;;  %560 = vlog2.f32 %v294_v7  ;;  %v340_v58 = vadd.s32 %v336_v33, %v335_v43  ;;  %vm341_vm0 = vcmp.lt.s32.totalorder %v337_v47, 130 }
  0x7b   : > { %v551_v12 = vpop.eup %550  ;;  %v281_v15 = vmul.f32 0.6931472, %v549_v10  ;;  %562 = vlog2.f32 %v295_v8  ;;  %vm342_vm1 = vcmp.lt.s32.totalorder %v338_v51, 130  ;;  %vm343_vm2 = vcmp.lt.s32.totalorder %v339_v55, 130 }
  0x7c   : > { %v553_v17 = vpop.eup %552  ;;  %v283_v18 = vmul.f32 0.6931472, %v551_v12  ;;  %vm344_vm3 = vcmp.lt.s32.totalorder %v340_v58, 130 }
  0x7d   : > { %v555_v19 = vpop.eup %554  ;;  %v285_v21 = vmul.f32 0.6931472, %v553_v17  ;;  %v288_v22 = vmax.f32 %v281_v15, -100.0 }
  0x7e   : > { %v557_v24 = vpop.eup %556  ;;  %v287_v25 = vmul.f32 0.6931472, %v555_v19  ;;  %v289_v26 = vmax.f32 %v283_v18, -100.0 }
  0x7f   : > { %v559_v29 = vpop.eup %558  ;;  %v290_v30 = vmax.f32 %v285_v21, -100.0  ;;  %v297_v31 = vmul.f32 0.6931472, %v557_v24  ;;  %v308_v42 = vmul.f32 %v288_v22, %v276_v11 }
  0x80   : > { %v561_v34 = vpop.eup %560  ;;  %v291_v35 = vmax.f32 %v287_v25, -100.0  ;;  %v299_v36 = vmul.f32 0.6931472, %v559_v29  ;;  %v309_v46 = vmul.f32 %v289_v26, %v277_v13 }
  0x81   : > { %v563_v39 = vpop.eup %562  ;;  %v301_v40 = vmul.f32 0.6931472, %v561_v34  ;;  %v304_v41 = vmax.f32 %v297_v31, -100.0  ;;  %v310_v49 = vmul.f32 %v290_v30, %v278_v14 }
  0x82   : > { %v303_v44 = vmul.f32 0.6931472, %v563_v39  ;;  %v305_v45 = vmax.f32 %v299_v36, -100.0  ;;  %v311_v53 = vmul.f32 %v291_v35, %v279_v20 }
  0x83   : > { %v306_v48 = vmax.f32 %v301_v40, -100.0  ;;  %v316_v50 = vmul.f32 %v312_v23, %v304_v41 }
  0x84   : > { %v307_v52 = vmax.f32 %v303_v44, -100.0  ;;  %v317_v54 = vmul.f32 %v313_v27, %v305_v45 }
  0x85   : > { %v318_v56 = vmul.f32 %v314_v28, %v306_v48  ;;  %v320_v57 = vadd.f32 %v316_v50, %v308_v42 }
  0x86   : > { %v319_v59 = vmul.f32 %v315_v37, %v307_v52  ;;  %v321_v60 = vadd.f32 %v317_v54, %v309_v46 }
  0x87   : > { %v322_v61 = vadd.f32 %v318_v56, %v310_v49  ;;  %v324_v62 = vsub.f32 0.0, %v320_v57 }
  0x88   : > { %v323_v63 = vadd.f32 %v319_v59, %v311_v53  ;;  %v325_v0 = vsub.f32 0.0, %v321_v60 }
  0x89   : > { %v326_v1 = vsub.f32 0.0, %v322_v61  ;;  %v353_v2 = vsel %vm341_vm0, %v324_v62, 0.0 }
  0x8a   : > { %v327_v3 = vsub.f32 0.0, %v323_v63  ;;  %v354_v4 = vsel %vm342_vm1, %v325_v0, 0.0 }
  0x8b   : > { %v355_v5 = vsel %vm343_vm2, %v326_v1, 0.0  ;;  %v357_v6 = vadd.f32 %v354_v4, %v353_v2 }
  0x8c   : > { %v356_v7 = vsel %vm344_vm3, %v327_v3, 0.0 }
  0x8d   : > { %v358_v8 = vadd.f32 %v357_v6, %v355_v5 }
  0x8f   : > { %v359_v10 = vadd.f32 %v358_v8, %v356_v7 }
  0x91   : > { %v361_v11 = vadd.f32 %v360_v9, %v359_v10 }
  0x93   : > { %362 = vst [vmem:[#allocation7] sm:$0xff] %v361_v11 }
  0x94   : > { %489 = dma.vmem_to_hbm [thread:$0]  (%p492_p8), %s372_s19, 128, %s374_s9, [#allocation4]  }
  0x95   : > { %703 = dma.done.wait (%p492_p8), [#allocation4], 128  }
  0x96   : > { %705 = vsyncadd (%p492_p8), [#allocation4], 4294967168 }
  0x97 PF: > { %s19_s14 = sadd.s32 1, %s728_s14   ;;  %s948_s9 = smov %s712_s10 }
  0x98   : > { %p16_p13 = scmp.ge.s32.totalorder %s19_s14, 7   ;;  %s949_s10 = smov %s716_s11 }
  0x99   : > { %s950_s11 = smov %s808_s23  ;;  %s951_s12 = smov %s724_s13 }
  0x9a   : > { %s952_s13 = smov %s954_s15  ;;  %18 = sbr.rel (!%p16_p13) target bundleno = 7 (0x7), region = 83 }
  0x9f   :  { %387 = vsyncpa [#allocation3], 1 }
  0xa0   :  { %389 = vsyncpa [#allocation3 + $0x1], 1 }
  0xa1   :  { %390 = vsyncpa [#allocation6], 1 }
  0xa2   :  { %392 = vsyncpa [#allocation6 + $0x1], 1 }
  0xa3   :  { %393 = vsyncpa [#allocation4], 1 }
  0xa4   :  { %395 = vsyncpa [#allocation4 + $0x1], 1 }

</bundles_post_ra>
